<compile_context>
chip_gen: v7x
topology: tpu7x:2x2x1
jax: 0.10.0
libtpu: 0.0.40
codegen_flags: <defaults>
</compile_context>

<pallas_src>
import math

import jax
import jax.numpy as jnp
from jax.experimental import pallas as pl
from jax.experimental.pallas import tpu as pltpu

_LANES = 128                              # block last dim is a multiple of this
_ROW_ALIGN = 32                           # sublane packing for f32/bf16/int8 alike
_TARGET_BLOCK_BYTES = 4 * 1024 * 1024     # ~4 MiB per buffer
_MIN_GRID_STEPS = 8                       # pipeline depth / 2-TC sharding on v7x
_VMEM_LIMIT_BYTES = 48 * 1024 * 1024      # under v7x's 64 MiB physical VMEM


def _round_up(v, m):
    return -(-v // m) * m


def _star_relu_kernel(sb_ref, x_ref, o_ref):
    """sb_ref: (2,) f32 in SMEM = [scale, bias]; x_ref/o_ref: (br, bc) tiles."""
    s = sb_ref[0]
    b = sb_ref[1]
    x = x_ref[...].astype(jnp.float32)
    r = jnp.maximum(x, 0.0)
    o_ref[...] = (s * (r * r) + b).astype(o_ref.dtype)


def _pick_block_cols(cols, itemsize):
    # Largest multiple of 128 such that even a 32-row block stays in budget.
    cap = max(_LANES,
              (_TARGET_BLOCK_BYTES // (_ROW_ALIGN * itemsize)) // _LANES * _LANES)
    return min(cols, cap)


def _pick_block_rows(rows, bytes_per_row):
    by_bytes = max(_ROW_ALIGN,
                   (_TARGET_BLOCK_BYTES // max(bytes_per_row, 1))
                   // _ROW_ALIGN * _ROW_ALIGN)
    # Keep >= _MIN_GRID_STEPS grid steps when the tensor is big enough.
    by_steps = max(_ROW_ALIGN, _round_up(pl.cdiv(rows, _MIN_GRID_STEPS), _ROW_ALIGN))
    return min(by_bytes, by_steps)


def _launch(x2, sb):
    rows, cols = x2.shape
    itemsize = x2.dtype.itemsize
    block_cols = _pick_block_cols(cols, itemsize)
    block_rows = _pick_block_rows(rows, block_cols * itemsize)
    grid = (pl.cdiv(rows, block_rows), pl.cdiv(cols, block_cols))
    return pl.pallas_call(
        _star_relu_kernel,
        out_shape=jax.ShapeDtypeStruct((rows, cols), x2.dtype),
        grid_spec=pltpu.PrefetchScalarGridSpec(
            num_scalar_prefetch=1,   # sb -> SMEM, passed first to kernel/index_maps
            grid=grid,
            in_specs=[pl.BlockSpec((block_rows, block_cols),
                                   lambda i, j, sb_ref: (i, j))],
            out_specs=pl.BlockSpec((block_rows, block_cols),
                                   lambda i, j, sb_ref: (i, j)),
        ),
        compiler_params=pltpu.CompilerParams(
            dimension_semantics=("parallel", "parallel"),
            vmem_limit_bytes=_VMEM_LIMIT_BYTES,
        ),
    )(sb, x2)


def star_relu(x, scale, bias):
    """StarReLU forward: scale * relu(x)**2 + bias (elementwise, any shape).

    scale, bias: shape-(1,) learnable parameters (as in the PyTorch module).
    """
    orig_shape = x.shape
    dtype = x.dtype
    n = math.prod(orig_shape) if orig_shape else 1

    sb = jnp.concatenate(
        [jnp.ravel(jnp.asarray(scale)), jnp.ravel(jnp.asarray(bias))]
    ).astype(jnp.float32)                                            # (2,)

    # Fast path: trailing dim already lane-aligned -> collapse leading dims
    # only (layout-preserving), no padding, no output slice.
    if x.ndim >= 2 and orig_shape[-1] % _LANES == 0:
        y2 = _launch(x.reshape(-1, orig_shape[-1]), sb)
        return y2.reshape(orig_shape)

    # General path: flatten to a lane-dense (rows, 128) layout.  Pad only when
    # n is not a multiple of 128 (at most 127 extra elements).
    rows = pl.cdiv(n, _LANES)
    pad = rows * _LANES - n
    xf = x.reshape(-1)
    if pad:
        xf = jnp.concatenate([xf, jnp.zeros((pad,), dtype)])
    y2 = _launch(xf.reshape(rows, _LANES), sb)
    y = y2.reshape(-1)
    if pad:
        y = y[:n]
    return y.reshape(orig_shape)


def ref_star_relu(x, scale, bias):
    """Pure-JAX reference matching the PyTorch module forward."""
    r = jnp.maximum(x.astype(jnp.float32), 0.0)
    y = scale.astype(jnp.float32) * r * r + bias.astype(jnp.float32)
    return y.astype(x.dtype)


if __name__ == "__main__":
    key = jax.random.PRNGKey(0)
    k1, k2 = jax.random.split(key)

    # Module parameters (shape (1,) as in nn.Parameter(scale_value*ones(1))),
    # non-default so the scale/bias path is actually exercised.
    scale = jnp.full((1,), 2.0, jnp.float32)
    bias = jnp.full((1,), 0.5, jnp.float32)

    fn = jax.jit(star_relu)

    # Shape implied by the encoder module (general / flatten path).
    x1 = jax.random.normal(k1, (2, 4, 16, 16), jnp.float32)
    y1 = jax.block_until_ready(fn(x1, scale, bias))
    r1 = ref_star_relu(x1, scale, bias)
    assert y1.shape == x1.shape, (y1.shape, x1.shape)
    assert jnp.allclose(y1, r1, atol=1e-5, rtol=1e-5), float(jnp.max(jnp.abs(y1 - r1)))

    # Lane-aligned trailing dim (fast (B, D) path) with a ragged row count.
    x2 = jax.random.normal(k2, (3, 5, 128), jnp.float32)
    y2 = jax.block_until_ready(fn(x2, scale, bias))
    r2 = ref_star_relu(x2, scale, bias)
    assert y2.shape == x2.shape, (y2.shape, x2.shape)
    assert jnp.allclose(y2, r2, atol=1e-5, rtol=1e-5), float(jnp.max(jnp.abs(y2 - r2)))

    print("KERNEL_OK")
</pallas_src>

<mosaic_0001>
module attributes {stable_mosaic.version = 11 : i64} {
  func.func @_star_relu_kernel(%arg0: i32, %arg1: i32, %arg2: memref<2xf32, #tpu.memory_space<smem>>, %arg3: memref<32x128xf32, #tpu.memory_space<vmem>>, %arg4: memref<32x128xf32, #tpu.memory_space<vmem>>) attributes {dimension_semantics = [#tpu.dimension_semantics<parallel>, #tpu.dimension_semantics<parallel>], iteration_bounds = array<i64: 1, 1>, scalar_prefetch = 1 : i64, scratch_operands = 0 : i64, tpu.core_type = #tpu.core_type<tc>, window_params = [{transform_indices = @transform_0, window_bounds = array<i64: 32, 128>}, {transform_indices = @transform_1, window_bounds = array<i64: 32, 128>}]} {
    %c0 = arith.constant 0 : index
    %0 = memref.load %arg2[%c0] : memref<2xf32, #tpu.memory_space<smem>>
    %c1 = arith.constant 1 : index
    %1 = memref.load %arg2[%c1] : memref<2xf32, #tpu.memory_space<smem>>
    %c0_0 = arith.constant 0 : index
    %c0_1 = arith.constant 0 : index
    %2 = vector.load %arg3[%c0_0, %c0_1] : memref<32x128xf32, #tpu.memory_space<vmem>>, vector<32x128xf32>
    %cst = arith.constant 0.000000e+00 : f32
    %3 = vector.broadcast %cst : f32 to vector<32x128xf32>
    %4 = arith.maximumf %2, %3 : vector<32x128xf32>
    %5 = arith.mulf %4, %4 : vector<32x128xf32>
    %6 = vector.broadcast %0 : f32 to vector<32x128xf32>
    %7 = arith.mulf %6, %5 : vector<32x128xf32>
    %8 = vector.broadcast %1 : f32 to vector<32x128xf32>
    %9 = arith.addf %7, %8 : vector<32x128xf32>
    %c0_2 = arith.constant 0 : index
    %c0_3 = arith.constant 0 : index
    %10 = vector.load %arg4[%c0_2, %c0_3] : memref<32x128xf32, #tpu.memory_space<vmem>>, vector<32x128xf32>
    tpu.vector_store %arg4[%c0_2, %c0_3], %9 {strides = array<i32>} : memref<32x128xf32, #tpu.memory_space<vmem>>, vector<32x128xf32>,
    return
  }
  func.func @transform_0(%arg0: i32, %arg1: i32, %arg2: memref<2xf32, #tpu.memory_space<smem>>) -> (i32, i32) {
    %c0_i32 = arith.constant 0 : i32
    return %arg0, %arg1 : i32, i32
  }
  func.func @transform_1(%arg0: i32, %arg1: i32, %arg2: memref<2xf32, #tpu.memory_space<smem>>) -> (i32, i32) {
    %c0_i32 = arith.constant 0 : i32
    return %arg0, %arg1 : i32, i32
  }
}

</mosaic_0001>

<bundles_post_ra>
// kernel: star_relu.1
= control target key start
LH: loop header
LB: loop body
LE: loop exit
PB: predicated region body
PF: predicated region fallthrough
CT: control target
= control target key end

     0   :  { %s134_s0 = inlined_call_operand.vmem [shape: f32[2], index: 0, kind: input, shape index: {}]   ;;  %s135_s1 = inlined_call_operand.vmem [shape: f32[16,128], index: 1, kind: input, shape index: {}]   ;;  %s136_s2 = inlined_call_operand.vmem [shape: f32[16,128], index: 2, kind: output, shape index: {}]  }
   0x1   :  { %s7_s11 = sshll.u32 %s134_s0, 4  ;;  %s8_s11 = int_to_ptr.vmem [resolvable:$true] %s7_s11 }
   0x2   :  { %s89_s12 = scalar_lea.vmem %s8_s11, 16  ;;  %p94_p1 = scmp.lt.s32.totalorder %s8_s11, %s8_s11 }
   0x3   :  { %p90_p0 = scmp.ne.s32.totalorder %s8_s11, %s89_s12  ;;  %p95_p2 = scmp.lt.s32.totalorder %s89_s12, %s89_s12 }
   0x5   :  { %p96_p3 = por %p95_p2, %p94_p1 }
   0x7   :  { %p97_p4 = pnand %p96_p3, %p90_p0 }
   0x9   :  { %100 = shalt.err (!%p97_p4)  }
   0xa   :  { %s103_s13 = smov [#allocation3]  }
   0xb   :  { %10 = dma.vmem_to_smem %s8_s11, 16, %s103_s13, [#allocation2] }
   0xc   :  { %101 = dma.done.wait [#allocation2], 16 }
   0xd   :  { %102 = vsyncadd [#allocation2], 4294967280 }
   0xe   :  { %12 = sfence }
   0xf   :  { %s15_s14 = sld [smem:[#allocation3]]  ;;  %s87_s15 = sld [smem:[#allocation3 + $0x1]]  ;;  %v17_v0 = vld [vmem:[%s135_s1] sm:$0xff]  ;;  %v18_v1 = vld [vmem:[%s135_s1 + $0x8] sm:$0xff] }
  0x10   :  { %v21_v2 = vmax.f32 %v17_v0, 0.0  ;;  %v22_v3 = vmax.f32 %v18_v1, 0.0 }
  0x12   :  { %v25_v4 = vmul.f32 %v21_v2, %v21_v2  ;;  %v26_v5 = vmul.f32 %v22_v3, %v22_v3 }
  0x15   :  { %v29_v6 = vstv %s15_s14  ;;  %v34_v7 = vstv %s87_s15 }
  0x16   :  { %v30_v8 = vmul.f32 %v29_v6, %v25_v4  ;;  %v31_v9 = vmul.f32 %v29_v6, %v26_v5 }
  0x18   :  { %v35_v10 = vadd.f32 %v34_v7, %v30_v8  ;;  %v36_v11 = vadd.f32 %v34_v7, %v31_v9 }
  0x1a   :  { %75 = vst [vmem:[%s136_s2] sm:$0xff] %v35_v10  ;;  %77 = vst [vmem:[%s136_s2 + $0x8] sm:$0xff] %v36_v11 }

</bundles_post_ra>
